<compile_context>
chip_gen: v5e
topology: v5e:2x2
jax: 0.10.0
libtpu: 0.0.40
codegen_flags: <defaults>
</compile_context>

<pallas_src>
import functools

import jax
import jax.numpy as jnp
from jax.experimental import pallas as pl
from jax.experimental.pallas import tpu as pltpu

_LANES = 128


def _layernorm_rowwise_kernel(x_ref, gamma_ref, beta_ref, o_ref, *, eps):
    # x_ref: (tile_rows, dim)   gamma_ref / beta_ref: (1, dim)
    x = x_ref[...].astype(jnp.float32)
    mean = jnp.mean(x, axis=-1, keepdims=True)            # XLU row reduction
    centered = x - mean
    var = jnp.mean(centered * centered, axis=-1, keepdims=True)
    inv = jax.lax.rsqrt(var + eps)                         # EUP rsqrt
    gamma = gamma_ref[...].astype(jnp.float32)
    beta = beta_ref[...].astype(jnp.float32)
    y = centered * (inv * gamma) + beta
    o_ref[...] = y.astype(o_ref.dtype)


def _layernorm_packed_kernel(x_ref, gamma_ref, beta_ref, avg_ref, o_ref, *, eps):
    # x_ref: (tile_rows, 128) where each 128-lane row packs k = 128//dim
    # logical rows of dim features.  avg_ref: (128, 128) block-diagonal
    # averaging matrix (1/dim within a segment, 0 elsewhere), so x @ avg
    # yields each segment's mean replicated across its dim lanes.
    x = x_ref[...].astype(jnp.float32)
    avg = avg_ref[...]
    mean = jnp.dot(x, avg, preferred_element_type=jnp.float32,
                   precision=jax.lax.Precision.HIGHEST)    # MXU segmented mean
    centered = x - mean
    var = jnp.dot(centered * centered, avg, preferred_element_type=jnp.float32,
                  precision=jax.lax.Precision.HIGHEST)     # MXU segmented var
    inv = jax.lax.rsqrt(var + eps)                         # EUP rsqrt
    gamma = gamma_ref[...].astype(jnp.float32)
    beta = beta_ref[...].astype(jnp.float32)
    y = centered * (inv * gamma) + beta
    o_ref[...] = y.astype(o_ref.dtype)


def _choose_tile_rows(rows, width, itemsize,
                      target_bytes=1536 * 1024,
                      min_grid_steps=2,
                      min_block_bytes=512 * 1024):
    """Rows per block, f32-upcast aware, sublane (8) aligned.

    Budgets ~1.5 MiB per input block using max(itemsize, 4) bytes/element
    (the kernel materializes full-tile f32 temporaries), keeps >= 2 grid
    steps when possible (v7x has 2 TensorCores) but never shrinks a block
    below ~512 KiB, and never exceeds the (sublane-rounded) row count.
    """
    bytes_per_row = max(width * max(itemsize, 4), 1)
    tile = (target_bytes // bytes_per_row) // 8 * 8
    tile = max(tile, 8)
    floor_rows = max(8, (min_block_bytes // bytes_per_row) // 8 * 8)
    cap = (rows // min_grid_steps) // 8 * 8
    if cap >= 8:
        tile = min(tile, max(cap, floor_rows))
    tile = min(tile, max(8, pl.cdiv(rows, 8) * 8))
    return int(tile)


def layer_norm(x, gamma, beta, eps=1e-6, tile_rows=None):
    """LayerNorm over the last axis of x.  x: (..., dim); gamma/beta: (dim,)."""
    orig_shape = x.shape
    dim = orig_shape[-1]
    rows = 1
    for s in orig_shape[:-1]:
        rows *= s

    x2d = x.reshape(rows, dim)
    itemsize = x2d.dtype.itemsize

    compiler_params = pltpu.CompilerParams(
        dimension_semantics=("parallel",),
        vmem_limit_bytes=32 * 1024 * 1024,
    )
    cost = pl.CostEstimate(
        flops=8 * rows * dim,
        transcendentals=rows,
        bytes_accessed=2 * rows * dim * itemsize + 2 * dim * 4,
    )

    pack = (dim < _LANES) and (_LANES % dim == 0) and (rows % (_LANES // dim) == 0)

    if pack:
        # Lane-dense packed path: k rows per 128-lane group (free reshape).
        k = _LANES // dim
        prows = rows // k
        xp = x2d.reshape(prows, _LANES)
        gamma_p = jnp.tile(gamma.reshape(-1), k).reshape(1, _LANES)
        beta_p = jnp.tile(beta.reshape(-1), k).reshape(1, _LANES)
        lane = jnp.arange(_LANES)
        seg = lane // dim
        avg = jnp.where(seg[:, None] == seg[None, :],
                        jnp.float32(1.0 / dim), jnp.float32(0.0))

        if tile_rows is None:
            tile_rows = _choose_tile_rows(prows, _LANES, itemsize)
        grid = (pl.cdiv(prows, tile_rows),)  # ragged last block: OOB masked

        out_p = pl.pallas_call(
            functools.partial(_layernorm_packed_kernel, eps=eps),
            out_shape=jax.ShapeDtypeStruct((prows, _LANES), x.dtype),
            grid_spec=pltpu.PrefetchScalarGridSpec(
                num_scalar_prefetch=0,
                grid=grid,
                in_specs=[
                    pl.BlockSpec((tile_rows, _LANES), lambda i: (i, 0)),
                    pl.BlockSpec((1, _LANES), lambda i: (0, 0)),
                    pl.BlockSpec((1, _LANES), lambda i: (0, 0)),
                    pl.BlockSpec((_LANES, _LANES), lambda i: (0, 0)),
                ],
                out_specs=pl.BlockSpec((tile_rows, _LANES), lambda i: (i, 0)),
            ),
            compiler_params=compiler_params,
            cost_estimate=cost,
        )(xp, gamma_p, beta_p, avg)
        return out_p.reshape(orig_shape)

    # Row-wise path (lane-dense whenever dim is a multiple of 128).
    gamma2d = gamma.reshape(1, dim)
    beta2d = beta.reshape(1, dim)

    if tile_rows is None:
        tile_rows = _choose_tile_rows(rows, dim, itemsize)
    grid = (pl.cdiv(rows, tile_rows),)  # ragged last block: OOB writes masked

    out2d = pl.pallas_call(
        functools.partial(_layernorm_rowwise_kernel, eps=eps),
        out_shape=jax.ShapeDtypeStruct((rows, dim), x.dtype),
        grid_spec=pltpu.PrefetchScalarGridSpec(
            num_scalar_prefetch=0,
            grid=grid,
            in_specs=[
                pl.BlockSpec((tile_rows, dim), lambda i: (i, 0)),
                pl.BlockSpec((1, dim), lambda i: (0, 0)),
                pl.BlockSpec((1, dim), lambda i: (0, 0)),
            ],
            out_specs=pl.BlockSpec((tile_rows, dim), lambda i: (i, 0)),
        ),
        compiler_params=compiler_params,
        cost_estimate=cost,
    )(x2d, gamma2d, beta2d)
    return out2d.reshape(orig_shape)


def _reference(x, gamma, beta, eps):
    mean = jnp.mean(x, axis=-1, keepdims=True)
    var = jnp.mean((x - mean) ** 2, axis=-1, keepdims=True)
    return (x - mean) / jnp.sqrt(var + eps) * gamma + beta


if __name__ == "__main__":
    eps = 1e-6

    # Packed lane-dense path: dim=32 < 128 -> 4 logical rows per 128-lane group.
    batch, seq, dim = 2, 8, 32
    key = jax.random.PRNGKey(0)
    x = jax.random.normal(key, (batch, seq, dim), dtype=jnp.float32)

    # Deterministic parameter init (matches nn.Parameter(torch.ones/zeros(dim))).
    gamma = jnp.ones((dim,), dtype=jnp.float32)
    beta = jnp.zeros((dim,), dtype=jnp.float32)

    out = jax.block_until_ready(layer_norm(x, gamma, beta, eps=eps))
    ref = _reference(x, gamma, beta, eps)
    assert jnp.allclose(out, ref, atol=1e-5, rtol=1e-5), "packed-path mismatch"

    # Fallback row-wise path: rows=15 not a multiple of the pack factor (4),
    # also exercises the ragged-last-block masked store.
    x2 = jax.random.normal(jax.random.PRNGKey(0), (3, 5, dim), dtype=jnp.float32)
    out2 = jax.block_until_ready(layer_norm(x2, gamma, beta, eps=eps))
    ref2 = _reference(x2, gamma, beta, eps)
    assert jnp.allclose(out2, ref2, atol=1e-5, rtol=1e-5), "fallback-path mismatch"

    # Lane-dense row-wise path: dim is a multiple of 128.
    dim3 = 128
    x3 = jax.random.normal(jax.random.PRNGKey(1), (2, 8, dim3), dtype=jnp.float32)
    g3 = jnp.ones((dim3,), dtype=jnp.float32)
    b3 = jnp.zeros((dim3,), dtype=jnp.float32)
    out3 = jax.block_until_ready(layer_norm(x3, g3, b3, eps=eps))
    ref3 = _reference(x3, g3, b3, eps)
    assert jnp.allclose(out3, ref3, atol=1e-5, rtol=1e-5), "wide-dim mismatch"

    print("KERNEL_OK")
</pallas_src>

<mosaic_0001>
module attributes {stable_mosaic.version = 11 : i64} {
  func.func @_layernorm_packed_kernel(%arg0: i32, %arg1: memref<8x128xf32, #tpu.memory_space<vmem>>, %arg2: memref<1x128xf32, #tpu.memory_space<vmem>>, %arg3: memref<1x128xf32, #tpu.memory_space<vmem>>, %arg4: memref<128x128xf32, #tpu.memory_space<vmem>>, %arg5: memref<8x128xf32, #tpu.memory_space<vmem>>) attributes {dimension_semantics = [#tpu.dimension_semantics<parallel>], iteration_bounds = array<i64: 1>, scalar_prefetch = 0 : i64, scratch_operands = 0 : i64, tpu.core_type = #tpu.core_type<tc>, window_params = [{transform_indices = @transform_0, window_bounds = array<i64: 8, 128>}, {pipeline_mode = #tpu.pipeline_mode<synchronous>, transform_indices = @transform_1, window_bounds = array<i64: 1, 128>}, {pipeline_mode = #tpu.pipeline_mode<synchronous>, transform_indices = @transform_2, window_bounds = array<i64: 1, 128>}, {pipeline_mode = #tpu.pipeline_mode<synchronous>, transform_indices = @transform_3, window_bounds = array<i64: 128, 128>}, {transform_indices = @transform_4, window_bounds = array<i64: 8, 128>}]} {
    %c0 = arith.constant 0 : index
    %c0_0 = arith.constant 0 : index
    %0 = vector.load %arg1[%c0, %c0_0] : memref<8x128xf32, #tpu.memory_space<vmem>>, vector<8x128xf32>
    %c0_1 = arith.constant 0 : index
    %c0_2 = arith.constant 0 : index
    %1 = vector.load %arg4[%c0_1, %c0_2] : memref<128x128xf32, #tpu.memory_space<vmem>>, vector<128x128xf32>
    %cst = arith.constant dense<0.000000e+00> : vector<8x128xf32>
    %2 = tpu.matmul %0, %1, %cst {dimension_numbers = #tpu.dot_dimension_numbers<[1], [0], [0], [1], [0, 0, 1, 1], [], []>, precision = #tpu.contract_precision<fp32>} : vector<8x128xf32>, vector<128x128xf32>, vector<8x128xf32> -> vector<8x128xf32>
    %3 = arith.subf %0, %2 : vector<8x128xf32>
    %4 = arith.mulf %3, %3 : vector<8x128xf32>
    %cst_3 = arith.constant dense<0.000000e+00> : vector<8x128xf32>
    %5 = tpu.matmul %4, %1, %cst_3 {dimension_numbers = #tpu.dot_dimension_numbers<[1], [0], [0], [1], [0, 0, 1, 1], [], []>, precision = #tpu.contract_precision<fp32>} : vector<8x128xf32>, vector<128x128xf32>, vector<8x128xf32> -> vector<8x128xf32>
    %cst_4 = arith.constant 9.99999997E-7 : f32
    %6 = vector.broadcast %cst_4 : f32 to vector<8x128xf32>
    %7 = arith.addf %5, %6 : vector<8x128xf32>
    %8 = math.rsqrt %7 : vector<8x128xf32>
    %c0_5 = arith.constant 0 : index
    %c0_6 = arith.constant 0 : index
    %9 = vector.load %arg2[%c0_5, %c0_6] : memref<1x128xf32, #tpu.memory_space<vmem>>, vector<1x128xf32>
    %c0_7 = arith.constant 0 : index
    %c0_8 = arith.constant 0 : index
    %10 = vector.load %arg3[%c0_7, %c0_8] : memref<1x128xf32, #tpu.memory_space<vmem>>, vector<1x128xf32>
    %11 = vector.broadcast %9 : vector<1x128xf32> to vector<8x128xf32>
    %12 = arith.mulf %8, %11 : vector<8x128xf32>
    %13 = arith.mulf %3, %12 : vector<8x128xf32>
    %14 = vector.broadcast %10 : vector<1x128xf32> to vector<8x128xf32>
    %15 = arith.addf %13, %14 : vector<8x128xf32>
    %c0_9 = arith.constant 0 : index
    %c0_10 = arith.constant 0 : index
    %16 = vector.load %arg5[%c0_9, %c0_10] : memref<8x128xf32, #tpu.memory_space<vmem>>, vector<8x128xf32>
    tpu.vector_store %arg5[%c0_9, %c0_10], %15 {strides = array<i32>} : memref<8x128xf32, #tpu.memory_space<vmem>>, vector<8x128xf32>,
    return
  }
  func.func @transform_0(%arg0: i32) -> (i32, i32) {
    %c0_i32 = arith.constant 0 : i32
    %c0_i32_0 = arith.constant 0 : i32
    return %arg0, %c0_i32 : i32, i32
  }
  func.func @transform_1(%arg0: i32) -> (i32, i32) {
    %c0_i32 = arith.constant 0 : i32
    %c0_i32_0 = arith.constant 0 : i32
    %c0_i32_1 = arith.constant 0 : i32
    return %c0_i32, %c0_i32_0 : i32, i32
  }
  func.func @transform_2(%arg0: i32) -> (i32, i32) {
    %c0_i32 = arith.constant 0 : i32
    %c0_i32_0 = arith.constant 0 : i32
    %c0_i32_1 = arith.constant 0 : i32
    return %c0_i32, %c0_i32_0 : i32, i32
  }
  func.func @transform_3(%arg0: i32) -> (i32, i32) {
    %c0_i32 = arith.constant 0 : i32
    %c0_i32_0 = arith.constant 0 : i32
    %c0_i32_1 = arith.constant 0 : i32
    return %c0_i32, %c0_i32_0 : i32, i32
  }
  func.func @transform_4(%arg0: i32) -> (i32, i32) {
    %c0_i32 = arith.constant 0 : i32
    %c0_i32_0 = arith.constant 0 : i32
    return %arg0, %c0_i32 : i32, i32
  }
}

</mosaic_0001>

<bundles_post_ra>
// kernel: tpu_custom_call.1
= control target key start
LH: loop header
LB: loop body
LE: loop exit
PB: predicated region body
PF: predicated region fallthrough
CT: control target
= control target key end

     0   :  { %9 = vsyncpa [#allocation3], 0  ;;  %s1369_s0 = inlined_call_operand.hbm [shape: f32[4,128], index: 0, kind: input, shape index: {}]   ;;  %s1370_s1 = inlined_call_operand.hbm [shape: f32[1,128], index: 1, kind: input, shape index: {}]   ;;  %s1371_s2 = inlined_call_operand.vmem [shape: f32[1,128], index: 2, kind: input, shape index: {}]   ;;  %s1372_s3 = inlined_call_operand.hbm [shape: f32[128,128], index: 3, kind: input, shape index: {}]   ;;  %s1373_s4 = inlined_call_operand.hbm [shape: f32[4,128], index: 4, kind: output, shape index: {}]  }
   0x1   :  { %10 = vsyncpa [#allocation6], 0 }
   0x2   :  { %11 = vsyncpa [#allocation4], 0  ;;  %s30_s17 = sshll.u32 %s1370_s1, 4  ;;  %s31_s17 = int_to_ptr.hbm [resolvable:$true] %s30_s17 }
   0x3   :  { %15 = vsyncadd [#allocation3], 64  ;;  %s920_s18 = smov [#allocation5]   ;;  %s16_s22 = sshll.u32 %s1369_s0, 4  ;;  %s17_s22 = int_to_ptr.hbm [resolvable:$true] %s16_s22 }
   0x4   :  { %s32_s19 = sshll.u32 %s920_s18, 4  ;;  %s921_s23 = smov [#allocation2]   ;;  %s33_s19 = int_to_ptr.vmem [resolvable:$true] %s32_s19 }
   0x5   :  { %35 = dma.hbm_to_vmem [thread:$0]  %s31_s17, 16, %s33_s19, [#allocation6]  }
   0x6   :  { %s18_s24 = sshll.u32 %s921_s23, 4  ;;  %s922_s25 = smov 64   ;;  %s19_s24 = int_to_ptr.vmem [resolvable:$true] %s18_s24 }
   0x7   :  { %s923_s26 = smov 4   ;;  %s42_s28 = sshll.u32 %s1372_s3, 4  ;;  %s43_s28 = int_to_ptr.hbm [resolvable:$true] %s42_s28 }
   0x8   :  { %24 = dma.hbm_to_vmem [thread:$0]  %s17_s22, 64, %s19_s24, [#allocation3], %s922_s25, %s922_s25, %s923_s26  }
   0x9   :  { %s924_s29 = smov [#allocation7]   ;;  %s925_s0 = smov 128  }
   0xa   :  { %s44_s30 = sshll.u32 %s924_s29, 4  ;;  %s926_s5 = smov 8   ;;  %s45_s30 = int_to_ptr.vmem [resolvable:$true] %s44_s30 }
   0xb   :  { %50 = dma.hbm_to_vmem [thread:$0]  %s43_s28, 2048, %s45_s30, [#allocation6], %s925_s0, %s925_s0, %s926_s5  }
   0xc   :  { %914 = dma.done.wait [#allocation3], 128  }
   0xd   :  { %915 = vsyncadd [#allocation3], 4294967168 }
   0xe   :  { %916 = dma.done.wait [#allocation6], 2064  }
   0xf   :  { %917 = vsyncadd [#allocation6], 4294965232  ;;  %v79_v0 = vld [vmem:[#allocation7 + $0x78] sm:$0xff]  ;;  %v78_v1 = vld [vmem:[#allocation7 + $0x70] sm:$0xff] }
  0x10   :  { %v77_v2 = vld [vmem:[#allocation7 + $0x68] sm:$0xff]  ;;  %v965_v3 = vand.u32 4294901760, %v79_v0  ;;  %v967_v4 = vand.u32 4294901760, %v78_v1  ;;  %v76_v6 = vld [vmem:[#allocation7 + $0x60] sm:$0xff]  ;;  %v75_v7 = vld [vmem:[#allocation7 + $0x58] sm:$0xff] }
  0x11   :  { %v969_v5 = vand.u32 4294901760, %v77_v2  ;;  %v74_v8 = vld [vmem:[#allocation7 + $0x50] sm:$0xff]  ;;  %v971_v9 = vand.u32 4294901760, %v76_v6  ;;  %v973_v10 = vand.u32 4294901760, %v75_v7  ;;  %v73_v12 = vld [vmem:[#allocation7 + $0x48] sm:$0xff]  ;;  %v72_v13 = vld [vmem:[#allocation7 + $0x40] sm:$0xff] }
  0x12   :  { %v975_v11 = vand.u32 4294901760, %v74_v8  ;;  %81 = vmatpush.msra.mxu0 %v965_v3  ;;  %v979_v14 = vsub.f32 %v79_v0, %v965_v3  ;;  %v982_v15 = vsub.f32 %v78_v1, %v967_v4  ;;  %v987_v17 = vand.u32 4294901760, %v73_v12  ;;  %v71_v18 = vld [vmem:[#allocation7 + $0x38] sm:$0xff]  ;;  %277 = vmatpush.msra.mxu3 %v965_v3  ;;  %v70_v26 = vld [vmem:[#allocation7 + $0x30] sm:$0xff]  ;;  %v69_v36 = vld [vmem:[#allocation7 + $0x28] sm:$0xff] }
  0x13   :  { %v985_v16 = vsub.f32 %v77_v2, %v969_v5  ;;  %v991_v19 = vsub.f32 %v76_v6, %v971_v9  ;;  %v994_v20 = vsub.f32 %v75_v7, %v973_v10  ;;  %v1009_v25 = vand.u32 4294901760, %v72_v13  ;;  %v68_v42 = vld [vmem:[#allocation7 + $0x20] sm:$0xff]  ;;  %v67_v47 = vld [vmem:[#allocation7 + $0x18] sm:$0xff]  ;;  %v66_v55 = vld [vmem:[#allocation7 + $0x10] sm:$0xff] }
  0x14   :  { %v997_v21 = vsub.f32 %v74_v8, %v975_v11  ;;  %83 = vmatpush.msra.mxu0 %v967_v4  ;;  %v1001_v22 = vand.u32 4294901760, %v979_v14  ;;  %v1004_v23 = vand.u32 4294901760, %v982_v15  ;;  %224 = vmatpush.msra.mxu2 %v979_v14  ;;  %v1015_v28 = vand.u32 4294901760, %v71_v18  ;;  %v65_v60 = vld [vmem:[#allocation7 + $0x8] sm:$0xff]  ;;  %v64_v1 = vld [vmem:[#allocation7] sm:$0xff]  ;;  %v1119_v7 = vld [vmem:[#allocation2] sm:$0xff] }
  0x15   :  { %v1007_v24 = vand.u32 4294901760, %v985_v16  ;;  %v1013_v27 = vand.u32 4294901760, %v991_v19  ;;  %v1018_v29 = vsub.f32 %v73_v12, %v987_v17  ;;  %279 = vmatpush.msra.mxu3 %v967_v4  ;;  %v1029_v33 = vand.u32 4294901760, %v994_v20  ;;  %1388 = vst [vmem:[#allocation18_spill] sm:$0xff] %v1119_v7 }
  0x16   :  { %85 = vmatpush.msra.mxu0 %v969_v5  ;;  %v124_v30 = vsub.f32 %v979_v14, %v1001_v22  ;;  %v130_v31 = vsub.f32 %v982_v15, %v1004_v23  ;;  %227 = vmatpush.msra.mxu2 %v982_v15  ;;  %v1033_v34 = vand.u32 4294901760, %v997_v21  ;;  %v1035_v35 = vand.u32 4294901760, %v70_v26 }
  0x17   :  { %v136_v32 = vsub.f32 %v985_v16, %v1007_v24  ;;  %281 = vmatpush.msra.mxu3 %v969_v5  ;;  %v142_v39 = vsub.f32 %v991_v19, %v1013_v27  ;;  %v1046_v40 = vsub.f32 %v72_v13, %v1009_v25  ;;  %v1050_v41 = vand.u32 4294901760, %v1018_v29 }
  0x18   :  { %v1038_v37 = vand.u32 4294901760, %v124_v30  ;;  %87 = vmatpush.msra.mxu0 %v971_v9  ;;  %v1041_v38 = vand.u32 4294901760, %v130_v31  ;;  %230 = vmatpush.msra.mxu2 %v985_v16  ;;  %v148_v44 = vsub.f32 %v994_v20, %v1029_v33  ;;  %v1059_v45 = vand.u32 4294901760, %v69_v36 }
  0x19   :  { %1382 = vst [vmem:[#allocation12_spill] sm:$0xff] %v1046_v40  ;;  %283 = vmatpush.msra.mxu3 %v971_v9  ;;  %v1055_v43 = vand.u32 4294901760, %v136_v32  ;;  %v1062_v46 = vsub.f32 %v71_v18, %v1015_v28  ;;  %v154_v48 = vsub.f32 %v997_v21, %v1033_v34  ;;  %v1070_v49 = vand.u32 4294901760, %v142_v39 }
  0x1a   :  { %126 = vmatpush.msra.mxu1 %v1038_v37  ;;  %89 = vmatpush.msra.mxu0 %v973_v10  ;;  %v1073_v50 = vand.u32 4294901760, %v1046_v40  ;;  %v1075_v51 = vand.u32 4294901760, %v68_v42  ;;  %v1078_v52 = vsub.f32 %v70_v26, %v1035_v35  ;;  %v160_v53 = vsub.f32 %v1018_v29, %v1050_v41 }
  0x1b   :  { %1383 = vst [vmem:[#allocation13_spill] sm:$0xff] %v1062_v46  ;;  %233 = vmatpush.msra.mxu2 %v991_v19  ;;  %285 = vmatpush.msra.mxu3 %v973_v10  ;;  %v1082_v54 = vand.u32 4294901760, %v67_v47  ;;  %v1088_v56 = vand.u32 4294901760, %v148_v44  ;;  %v1091_v57 = vand.u32 4294901760, %v1062_v46  ;;  %v1094_v58 = vsub.f32 %v69_v36, %v1059_v45 }
  0x1c   :  { %132 = vmatpush.msra.mxu1 %v1041_v38  ;;  %91 = vmatpush.msra.mxu0 %v975_v11  ;;  %1384 = vst [vmem:[#allocation14_spill] sm:$0xff] %v1078_v52  ;;  %v1096_v59 = vand.u32 4294901760, %v154_v48  ;;  %v166_v61 = vsub.f32 %v1046_v40, %v1073_v50  ;;  %v1105_v62 = vand.u32 4294901760, %v1078_v52  ;;  %v1107_v63 = vand.u32 4294901760, %v66_v55 }
  0x1d   :  { %236 = vmatpush.msra.mxu2 %v994_v20  ;;  %287 = vmatpush.msra.mxu3 %v975_v11  ;;  %1385 = vst [vmem:[#allocation15_spill] sm:$0xff] %v1094_v58  ;;  %v1110_v0 = vsub.f32 %v68_v42, %v1075_v51  ;;  %v1112_v2 = vand.u32 4294901760, %v160_v53  ;;  %v1115_v6 = vsub.f32 %v67_v47, %v1082_v54  ;;  %v1126_v12 = vand.u32 4294901760, %v1094_v58 }
  0x1e   :  { %138 = vmatpush.msra.mxu1 %v1055_v43  ;;  %93 = vmatpush.msra.mxu0 %v987_v17  ;;  %v172_v8 = vsub.f32 %v1062_v46, %v1091_v57  ;;  %v1128_v13 = vand.u32 4294901760, %v65_v60  ;;  %v1131_v18 = vand.u32 4294901760, %v1119_v7  ;;  %v1133_v26 = vand.u32 4294901760, %v64_v1 }
  0x1f   :  { %239 = vmatpush.msra.mxu2 %v997_v21  ;;  %289 = vmatpush.msra.mxu3 %v987_v17  ;;  %1386 = vst [vmem:[#allocation16_spill] sm:$0xff] %v1110_v0  ;;  %v1139_v30 = vand.u32 4294901760, %v166_v61  ;;  %v178_v31 = vsub.f32 %v1078_v52, %v1105_v62  ;;  %v1144_v32 = vand.u32 4294901760, %v1110_v0  ;;  %v1147_v36 = vsub.f32 %v66_v55, %v1107_v63 }
  0x20   :  { %144 = vmatpush.msra.mxu1 %v1070_v49  ;;  %95 = vmatpush.msra.mxu0 %v1009_v25  ;;  %1387 = vst [vmem:[#allocation17_spill] sm:$0xff] %v1115_v6  ;;  %v1150_v39 = vand.u32 4294901760, %v1115_v6  ;;  %v1156_v42 = vand.u32 4294901760, %v172_v8  ;;  %v184_v44 = vsub.f32 %v1094_v58, %v1126_v12  ;;  %v1161_v47 = vsub.f32 %v65_v60, %v1128_v13 }
  0x21   :  { %242 = vmatpush.msra.mxu2 %v1018_v29  ;;  %291 = vmatpush.msra.mxu3 %v1009_v25  ;;  %1389 = vst [vmem:[#allocation19_spill] sm:$0xff] %v1147_v36  ;;  %v113_v48 = vsub.f32 %v1119_v7, %v1131_v18  ;;  %v1169_v53 = vand.u32 4294901760, %v178_v31  ;;  %v190_v55 = vsub.f32 %v1110_v0, %v1144_v32  ;;  %v1174_v61 = vand.u32 4294901760, %v1147_v36 }
  0x22   :  { %150 = vmatpush.msra.mxu1 %v1088_v56  ;;  %97 = vmatpush.msra.mxu0 %v1015_v28  ;;  %v1177_v60 = vsub.f32 %v64_v1, %v1133_v26  ;;  %v1183_v8 = vand.u32 4294901760, %v184_v44  ;;  %v196_v31 = vsub.f32 %v1115_v6, %v1150_v39  ;;  %v1188_v7 = vand.u32 4294901760, %v1161_v47 }
  0x23   :  { %245 = vmatpush.msra.mxu2 %v1046_v40  ;;  %293 = vmatpush.msra.mxu3 %v1015_v28  ;;  %v1194_v1 = vand.u32 4294901760, %v190_v55  ;;  %v202_v44 = vsub.f32 %v1147_v36, %v1174_v61 }
  0x24   :  { %156 = vmatpush.msra.mxu1 %v1096_v59  ;;  %99 = vmatpush.msra.mxu0 %v1035_v35  ;;  %v208_v55 = vsub.f32 %v1161_v47, %v1188_v7 }
  0x25   :  { %248 = vmatpush.msra.mxu2 %v1062_v46  ;;  %295 = vmatpush.msra.mxu3 %v1035_v35 }
  0x26   :  { %162 = vmatpush.msra.mxu1 %v1112_v2  ;;  %101 = vmatpush.msra.mxu0 %v1059_v45 }
  0x27   :  { %251 = vmatpush.msra.mxu2 %v1078_v52  ;;  %297 = vmatpush.msra.mxu3 %v1059_v45  ;;  %v114_v52 = vand.u32 4294901760, %v113_v48 }
  0x28   :  { %168 = vmatpush.msra.mxu1 %v1139_v30  ;;  %103 = vmatpush.msra.mxu0 %v1075_v51 }
  0x29   :  { %254 = vmatpush.msra.mxu2 %v1094_v58  ;;  %299 = vmatpush.msra.mxu3 %v1075_v51  ;;  %v1199_v58 = vand.u32 4294901760, %v1177_v60  ;;  %v115_v46 = vsub.f32 %v113_v48, %v114_v52 }
  0x2a   :  { %174 = vmatpush.msra.mxu1 %v1156_v42  ;;  %105 = vmatpush.msra.mxu0 %v1082_v54 }
  0x2b   :  { %257 = vmatpush.msra.mxu2 %v1110_v0  ;;  %301 = vmatpush.msra.mxu3 %v1082_v54  ;;  %v1205_v0 = vand.u32 4294901760, %v196_v31  ;;  %v214_v40 = vsub.f32 %v1177_v60, %v1199_v58  ;;  %v1220_v31 = vand.u32 4294901760, %v208_v55 }
  0x2c   :  { %180 = vmatpush.msra.mxu1 %v1169_v53  ;;  %107 = vmatpush.msra.mxu0 %v1107_v63 }
  0x2d   :  { %260 = vmatpush.msra.mxu2 %v1115_v6  ;;  %303 = vmatpush.msra.mxu3 %v1107_v63  ;;  %v1213_v6 = vand.u32 4294901760, %v202_v44  ;;  %v1226_v44 = vand.u32 4294901760, %v214_v40 }
  0x2e   :  { %186 = vmatpush.msra.mxu1 %v1183_v8  ;;  %109 = vmatpush.msra.mxu0 %v1128_v13 }
  0x2f   :  { %263 = vmatpush.msra.mxu2 %v1147_v36  ;;  %305 = vmatpush.msra.mxu3 %v1128_v13  ;;  %v116_v36 = vand.u32 4294901760, %v115_v46 }
  0x30   :  { %192 = vmatpush.msra.mxu1 %v1194_v1  ;;  %111 = vmatpush.msra.mxu0 %v1133_v26 }
  0x31   :  { %266 = vmatpush.msra.mxu2 %v1161_v47  ;;  %307 = vmatpush.msra.mxu3 %v1133_v26 }
  0x32   :  { %318 = vmatpush.msrb.mxu0 %v1001_v22  ;;  %198 = vmatpush.msra.mxu1 %v1205_v0 }
  0x33   :  { %269 = vmatpush.msra.mxu2 %v1177_v60  ;;  %311 = vmatmul.f32.vlgmr.msra.gmra.mxu3 %v114_v52 }
  0x34   :  { %322 = vmatpush.msrb.mxu0 %v1004_v23  ;;  %204 = vmatpush.msra.mxu1 %v1213_v6 }
  0x35   :  { %272 = vmatmul.f32.vlgmr.msra.gmra.mxu2 %v113_v48  ;;  %117 = vmatmul.f32.vlgmr.msra.gmra.mxu0 %v116_v36 }
  0x36   :  { %326 = vmatpush.msrb.mxu0 %v1007_v24  ;;  %210 = vmatpush.msra.mxu1 %v1220_v31 }
  0x37   :  { %469 = vmatpush.msrb.mxu3 %v1038_v37  ;;  %424 = vmatpush.msrb.mxu2 %v965_v3 }
  0x38   :  { %330 = vmatpush.msrb.mxu0 %v1013_v27  ;;  %216 = vmatpush.msra.mxu1 %v1226_v44 }
  0x39   :  { %218 = vmatmul.f32.vlgmr.msra.gmra.mxu1 %v1131_v18  ;;  %475 = vmatpush.msrb.mxu3 %v1041_v38 }
  0x3a   :  { %385 = vmatpush.msrb.mxu1 %v965_v3  ;;  %334 = vmatpush.msrb.mxu0 %v1029_v33 }
  0x3b   :  { %481 = vmatpush.msrb.mxu3 %v1055_v43  ;;  %426 = vmatpush.msrb.mxu2 %v967_v4 }
  0x3c   :  { %387 = vmatpush.msrb.mxu1 %v967_v4  ;;  %338 = vmatpush.msrb.mxu0 %v1033_v34 }
  0x3d   :  { %487 = vmatpush.msrb.mxu3 %v1070_v49  ;;  %428 = vmatpush.msrb.mxu2 %v969_v5 }
  0x3e   :  { %389 = vmatpush.msrb.mxu1 %v969_v5  ;;  %342 = vmatpush.msrb.mxu0 %v1050_v41 }
  0x3f   :  { %493 = vmatpush.msrb.mxu3 %v1088_v56  ;;  %430 = vmatpush.msrb.mxu2 %v971_v9 }
  0x40   :  { %391 = vmatpush.msrb.mxu1 %v971_v9  ;;  %346 = vmatpush.msrb.mxu0 %v1073_v50 }
  0x41   :  { %499 = vmatpush.msrb.mxu3 %v1096_v59  ;;  %432 = vmatpush.msrb.mxu2 %v973_v10 }
  0x42   :  { %393 = vmatpush.msrb.mxu1 %v973_v10  ;;  %350 = vmatpush.msrb.mxu0 %v1091_v57 }
  0x43   :  { %505 = vmatpush.msrb.mxu3 %v1112_v2  ;;  %434 = vmatpush.msrb.mxu2 %v975_v11 }
  0x44   :  { %395 = vmatpush.msrb.mxu1 %v975_v11  ;;  %354 = vmatpush.msrb.mxu0 %v1105_v62 }
  0x45   :  { %511 = vmatpush.msrb.mxu3 %v1139_v30  ;;  %436 = vmatpush.msrb.mxu2 %v987_v17 }
  0x46   :  { %397 = vmatpush.msrb.mxu1 %v987_v17  ;;  %358 = vmatpush.msrb.mxu0 %v1126_v12 }
  0x47   :  { %517 = vmatpush.msrb.mxu3 %v1156_v42  ;;  %438 = vmatpush.msrb.mxu2 %v1009_v25 }
  0x48   :  { %399 = vmatpush.msrb.mxu1 %v1009_v25  ;;  %362 = vmatpush.msrb.mxu0 %v1144_v32 }
  0x49   :  { %523 = vmatpush.msrb.mxu3 %v1169_v53  ;;  %440 = vmatpush.msrb.mxu2 %v1015_v28 }
  0x4a   :  { %401 = vmatpush.msrb.mxu1 %v1015_v28  ;;  %366 = vmatpush.msrb.mxu0 %v1150_v39 }
  0x4b   :  { %529 = vmatpush.msrb.mxu3 %v1183_v8  ;;  %442 = vmatpush.msrb.mxu2 %v1035_v35 }
  0x4c   :  { %403 = vmatpush.msrb.mxu1 %v1035_v35  ;;  %370 = vmatpush.msrb.mxu0 %v1174_v61 }
  0x4d   :  { %535 = vmatpush.msrb.mxu3 %v1194_v1  ;;  %444 = vmatpush.msrb.mxu2 %v1059_v45 }
  0x4e   :  { %405 = vmatpush.msrb.mxu1 %v1059_v45  ;;  %374 = vmatpush.msrb.mxu0 %v1188_v7 }
  0x4f   :  { %541 = vmatpush.msrb.mxu3 %v1205_v0  ;;  %446 = vmatpush.msrb.mxu2 %v1075_v51 }
  0x50   :  { %407 = vmatpush.msrb.mxu1 %v1075_v51  ;;  %378 = vmatpush.msrb.mxu0 %v1199_v58 }
  0x51   :  { %380 = vmatmul.f32.vlgmr.msrb.gmra.mxu0 %v1131_v18  ;;  %547 = vmatpush.msrb.mxu3 %v1213_v6  ;;  %v814_v6 = vld [vmem:[#allocation5] ss:$0 sm:$0xff] }
  0x52   :  { %409 = vmatpush.msrb.mxu1 %v1082_v54  ;;  %567 = vmatpush.msra.mxu0 %v979_v14  ;;  %v1396_v14 = vld [vmem:[#allocation19_spill] sm:$0xff] }
  0x53   :  { %553 = vmatpush.msrb.mxu3 %v1220_v31  ;;  %448 = vmatpush.msrb.mxu2 %v1082_v54 }
  0x54   :  { %411 = vmatpush.msrb.mxu1 %v1107_v63  ;;  %570 = vmatpush.msra.mxu0 %v982_v15 }
  0x55   :  { %559 = vmatpush.msrb.mxu3 %v1226_v44  ;;  %450 = vmatpush.msrb.mxu2 %v1107_v63 }
  0x56   :  { %413 = vmatpush.msrb.mxu1 %v1128_v13  ;;  %573 = vmatpush.msra.mxu0 %v985_v16 }
  0x57   :  { %728 = vmatpush.msra.mxu3 %v965_v3  ;;  %452 = vmatpush.msrb.mxu2 %v1128_v13 }
  0x58   :  { %415 = vmatpush.msrb.mxu1 %v1133_v26  ;;  %576 = vmatpush.msra.mxu0 %v991_v19 }
  0x59   :  { %417 = vmatmul.f32.vlgmr.msrb.gmra.mxu1 %v1131_v18  ;;  %730 = vmatpush.msra.mxu3 %v967_v4  ;;  %v815_v18 = vld [vmem:[%s1371_s2] ss:$0 sm:$0xff] }
  0x5a   :  { %620 = vmatpush.msra.mxu1 %v965_v3  ;;  %579 = vmatpush.msra.mxu0 %v994_v20  ;;  %v1390_v3 = vld [vmem:[#allocation12_spill] sm:$0xff] }
  0x5b   :  { %732 = vmatpush.msra.mxu3 %v969_v5  ;;  %454 = vmatpush.msrb.mxu2 %v1133_v26 }
  0x5c   :  { %622 = vmatpush.msra.mxu1 %v967_v4  ;;  %582 = vmatpush.msra.mxu0 %v997_v21  ;;  %v1391_v4 = vld [vmem:[#allocation13_spill] sm:$0xff] }
  0x5d   :  { %734 = vmatpush.msra.mxu3 %v971_v9  ;;  %661 = vmatpush.msra.mxu2 %v1001_v22 }
  0x5e   :  { %624 = vmatpush.msra.mxu1 %v969_v5  ;;  %585 = vmatpush.msra.mxu0 %v1018_v29  ;;  %v1392_v5 = vld [vmem:[#allocation14_spill] sm:$0xff] }
  0x5f   :  { %736 = vmatpush.msra.mxu3 %v973_v10  ;;  %665 = vmatpush.msra.mxu2 %v1004_v23 }
  0x60   :  { %626 = vmatpush.msra.mxu1 %v971_v9  ;;  %588 = vmatpush.msra.mxu0 %v1390_v3  ;;  %v1393_v9 = vld [vmem:[#allocation15_spill] sm:$0xff] }
  0x61   :  { %738 = vmatpush.msra.mxu3 %v975_v11  ;;  %669 = vmatpush.msra.mxu2 %v1007_v24 }
  0x62   :  { %628 = vmatpush.msra.mxu1 %v973_v10  ;;  %591 = vmatpush.msra.mxu0 %v1391_v4  ;;  %v1394_v10 = vld [vmem:[#allocation16_spill] sm:$0xff] }
  0x63   :  { %740 = vmatpush.msra.mxu3 %v987_v17  ;;  %673 = vmatpush.msra.mxu2 %v1013_v27 }
  0x64   :  { %630 = vmatpush.msra.mxu1 %v975_v11  ;;  %594 = vmatpush.msra.mxu0 %v1392_v5  ;;  %v1395_v11 = vld [vmem:[#allocation17_spill] sm:$0xff] }
  0x65   :  { %742 = vmatpush.msra.mxu3 %v1009_v25  ;;  %677 = vmatpush.msra.mxu2 %v1029_v33 }
  0x66   :  { %632 = vmatpush.msra.mxu1 %v987_v17  ;;  %597 = vmatpush.msra.mxu0 %v1393_v9 }
  0x67   :  { %744 = vmatpush.msra.mxu3 %v1015_v28  ;;  %681 = vmatpush.msra.mxu2 %v1033_v34 }
  0x68   :  { %634 = vmatpush.msra.mxu1 %v1009_v25  ;;  %600 = vmatpush.msra.mxu0 %v1394_v10 }
  0x69   :  { %746 = vmatpush.msra.mxu3 %v1035_v35  ;;  %685 = vmatpush.msra.mxu2 %v1050_v41 }
  0x6a   :  { %636 = vmatpush.msra.mxu1 %v1015_v28  ;;  %603 = vmatpush.msra.mxu0 %v1395_v11  ;;  %v1397_v28 = vld [vmem:[#allocation18_spill] sm:$0xff] }
  0x6b   :  { %748 = vmatpush.msra.mxu3 %v1059_v45  ;;  %689 = vmatpush.msra.mxu2 %v1073_v50 }
  0x6c   :  { %638 = vmatpush.msra.mxu1 %v1035_v35  ;;  %606 = vmatpush.msra.mxu0 %v1396_v14 }
  0x6d   :  { %750 = vmatpush.msra.mxu3 %v1075_v51  ;;  %693 = vmatpush.msra.mxu2 %v1091_v57 }
  0x6e   :  { %640 = vmatpush.msra.mxu1 %v1059_v45  ;;  %609 = vmatpush.msra.mxu0 %v1161_v47 }
  0x6f   :  { %752 = vmatpush.msra.mxu3 %v1082_v54  ;;  %697 = vmatpush.msra.mxu2 %v1105_v62 }
  0x70   :  { %642 = vmatpush.msra.mxu1 %v1075_v51  ;;  %612 = vmatpush.msra.mxu0 %v1177_v60 }
  0x71   :  { %754 = vmatpush.msra.mxu3 %v1107_v63  ;;  %701 = vmatpush.msra.mxu2 %v1126_v12 }
  0x72   :  { %644 = vmatpush.msra.mxu1 %v1082_v54 }
  0x73   :  { %756 = vmatpush.msra.mxu3 %v1128_v13  ;;  %705 = vmatpush.msra.mxu2 %v1144_v32 }
  0x74   :  { %646 = vmatpush.msra.mxu1 %v1107_v63 }
  0x75   :  { %758 = vmatpush.msra.mxu3 %v1133_v26  ;;  %709 = vmatpush.msra.mxu2 %v1150_v39 }
  0x76   :  { %648 = vmatpush.msra.mxu1 %v1128_v13 }
  0x77   :  { %713 = vmatpush.msra.mxu2 %v1174_v61 }
  0x78   :  { %650 = vmatpush.msra.mxu1 %v1133_v26 }
  0x79   :  { %717 = vmatpush.msra.mxu2 %v1188_v7 }
  0x7b   :  { %721 = vmatpush.msra.mxu2 %v1199_v58 }
  0xb2   :  { %v118_v16 = vpop.f32.mrf.mxu0 }
  0xb6   :  { %v219_v15 = vpop.f32.mrf.mxu1  ;;  %v312_v21 = vpop.f32.mrf.mxu3 }
  0xb7   :  { %v220_v17 = vadd.f32 %v219_v15, %v118_v16 }
  0xb8   :  { %v273_v19 = vpop.f32.mrf.mxu2 }
  0xb9   :  { %v274_v20 = vadd.f32 %v273_v19, %v220_v17 }
  0xbb   :  { %v313_v22 = vadd.f32 %v312_v21, %v274_v20 }
  0xce   :  { %v381_v23 = vpop.f32.mrf.mxu0 }
  0xcf   :  { %v382_v24 = vadd.f32 %v381_v23, %v313_v22 }
  0xd6   :  { %v418_v25 = vpop.f32.mrf.mxu1 }
  0xd7   :  { %v419_v27 = vadd.f32 %v418_v25, %v382_v24 }
  0xd9   :  { %v421_v29 = vsub.f32 %v1397_v28, %v419_v27 }
  0xdb   :  { %v422_v33 = vmul.f32 %v421_v29, %v421_v29 }
  0xdd   :  { %v455_v34 = vand.u32 4294901760, %v422_v33 }
  0xdf   :  { %v456_v35 = vsub.f32 %v422_v33, %v455_v34  ;;  %561 = vmatmul.f32.vlgmr.msrb.gmra.mxu3 %v455_v34 }
  0xe1   :  { %615 = vmatmul.f32.vlgmr.msra.gmra.mxu0 %v456_v35  ;;  %v457_v37 = vand.u32 4294901760, %v456_v35 }
  0xe3   :  { %654 = vmatmul.f32.vlgmr.msra.gmra.mxu1 %v457_v37  ;;  %v458_v38 = vsub.f32 %v456_v35, %v457_v37 }
  0xe5   :  { %v459_v40 = vand.u32 4294901760, %v458_v38 }
  0xe7   :  { %460 = vmatmul.f32.vlgmr.msrb.gmra.mxu2 %v459_v40  ;;  %760 = vmatmul.f32.vlgmr.msra.gmra.mxu3 %v455_v34 }
  0xef   :  { %723 = vmatmul.f32.vlgmr.msra.gmra.mxu2 %v455_v34 }
 0x15e   :  { %v616_v49 = vpop.f32.mrf.mxu0 }
 0x160   :  { %v655_v51 = vpop.f32.mrf.mxu1 }
 0x162   :  { %v562_v41 = vpop.f32.mrf.mxu3 }
 0x16a   :  { %v461_v43 = vpop.f32.mrf.mxu2  ;;  %v761_v57 = vpop.f32.mrf.mxu3 }
 0x16b   :  { %v462_v45 = vadd.f32 1e-06, %v461_v43 }
 0x16d   :  { %v563_v46 = vadd.f32 %v562_v41, %v462_v45 }
 0x16f   :  { %v617_v50 = vadd.f32 %v616_v49, %v563_v46 }
 0x171   :  { %v656_v52 = vadd.f32 %v655_v51, %v617_v50 }
 0x172   :  { %v724_v54 = vpop.f32.mrf.mxu2 }
 0x173   :  { %v725_v56 = vadd.f32 %v724_v54, %v656_v52 }
 0x175   :  { %v762_v58 = vadd.f32 %v761_v57, %v725_v56 }
 0x177   :  { %816 = vrsqrt.f32 %v762_v58  ;;  %vm770_vm1 = vweird.f32 %v762_v58 }
 0x17d   :  { %v817_v59 = vpop.eup %816 }
 0x17e   :  { %v765_v62 = vmul.f32 %v817_v59, %v762_v58  ;;  %vm771_vm0 = vweird.f32 %v817_v59 }
 0x17f   :  { %vm772_vm2 = vmor %vm770_vm1, %vm771_vm0 }
 0x180   :  { %v766_v63 = vmul.f32 %v817_v59, %v765_v62 }
 0x182   :  { %v767_v0 = vmul.f32 0.5, %v766_v63 }
 0x184   :  { %v768_v2 = vsub.f32 1.5, %v767_v0 }
 0x186   :  { %v769_v7 = vmul.f32 %v817_v59, %v768_v2 }
 0x188   :  { %v773_v12 = vsel %vm772_vm2, %v817_v59, %v769_v7 }
 0x189   :  { %v779_v13 = vmul.f32 %v814_v6, %v773_v12 }
 0x18b   :  { %v780_v26 = vmul.f32 %v779_v13, %v421_v29 }
 0x18d   :  { %v784_v30 = vadd.f32 %v815_v18, %v780_v26 }
 0x18f   :  { %785 = vst [vmem:[#allocation8] sm:$0xff] %v784_v30 }
 0x190   :  { %789 = vsyncadd [#allocation4], 64  ;;  %s792_s9 = sshll.u32 %s1373_s4, 4  ;;  %s927_s10 = smov [#allocation8]   ;;  %s793_s9 = int_to_ptr.hbm [resolvable:$true] %s792_s9 }
 0x191   :  { %s790_s11 = sshll.u32 %s927_s10, 4  ;;  %s791_s11 = int_to_ptr.vmem [resolvable:$true] %s790_s11 }
 0x192   :  { %798 = dma.vmem_to_hbm [thread:$0]  %s791_s11, 64, %s793_s9, [#allocation4], %s922_s25, %s922_s25, %s923_s26  }
 0x193   :  { %918 = dma.done.wait [#allocation4], 128  }
 0x194   :  { %919 = vsyncadd [#allocation4], 4294967168 }
 0x195   :  { %803 = vsyncpa [#allocation3], 1 }
 0x196   :  { %804 = vsyncpa [#allocation6], 1 }
 0x197   :  { %805 = vsyncpa [#allocation4], 1 }

</bundles_post_ra>
